<compile_context>
chip_gen: v5e
topology: v5e:2x2
jax: 0.10.0
libtpu: 0.0.40
codegen_flags: <defaults>
</compile_context>

<pallas_src>
import functools

import jax
import jax.numpy as jnp
from jax.experimental import pallas as pl
from jax.experimental.pallas import tpu as pltpu


# ---------------------------------------------------------------------------
# Generation-aware VMEM budgets.
# ---------------------------------------------------------------------------
def _vmem_budget():
    try:
        info = pltpu.get_tpu_info()
        cap = int(getattr(info, "vmem_capacity_bytes", 128 << 20))
    except Exception:  # no TPU info available: assume the 128 MiB parts
        cap = 128 << 20
    small_vmem = cap <= (80 << 20)          # v7x-like: 64 MiB/TC, 2 TCs/chip
    if small_vmem:
        fused_block_limit = 6 << 20         # per-image (C, HW) slab threshold
        vmem_cap = 40 << 20                 # leave headroom of 64 MiB physical
    else:                                   # v5e / v6e: 128 MiB VMEM, 1 TC
        fused_block_limit = 14 << 20
        vmem_cap = 88 << 20
    return small_vmem, fused_block_limit, vmem_cap


def _pick_hw_tile(hw, c, itemsize, target_tile_bytes=4 << 20):
    """Largest multiple of 128 dividing hw with C*tile*itemsize <= target.

    hw must already be a multiple of 128 (caller pads if needed), so 128 is
    always a legal fallback.
    """
    per_lane = max(c * itemsize, 1)
    max_lanes = max(128, (target_tile_bytes // per_lane) // 128 * 128)
    best = 128
    t = 128
    while t <= min(hw, max_lanes):
        if hw % t == 0:
            best = t
        t += 128
    return best


# ---------------------------------------------------------------------------
# Fused single-pass kernel: one batch image (C, HW) resident in VMEM.
# ---------------------------------------------------------------------------
def _fused_kernel(inv_hw, x_ref, w1_ref, b1_ref, w2_ref, b2_ref, o_ref):
    # x_ref: (1, C, HW); w1: (Ch, C); b1: (Ch, 1); w2: (C, Ch); b2: (C, 1)
    x = x_ref[0]                                              # (C, HW), input dtype

    # Global average pool: f32 accumulation via reduction dtype (no f32 copy
    # of the image block is materialized in VMEM).
    pooled = jnp.sum(x, axis=-1, keepdims=True,
                     dtype=jnp.float32) * inv_hw              # (C, 1), f32

    # Squeeze/excite MLP; torch Linear weights are (out, in) so they
    # left-multiply the pooled column directly (no transposes).
    h = jnp.dot(w1_ref[...], pooled,
                preferred_element_type=jnp.float32) + b1_ref[...]     # (Ch, 1)
    h = jnp.maximum(h, 0.0)
    a = jnp.dot(w2_ref[...], h,
                preferred_element_type=jnp.float32) + b2_ref[...]     # (C, 1)
    att = jax.nn.sigmoid(a)                                           # (C, 1)

    # Per-channel rescale in the input dtype (only the (C,1) column was f32).
    o_ref[0] = x * att.astype(o_ref.dtype)


# ---------------------------------------------------------------------------
# Two-pass HW-tiled path (bounded VMEM).  Pass 1 pools AND runs the tiny MLP
# on the last tile, emitting the attention column directly; pass 2 rescales.
# ---------------------------------------------------------------------------
def _pool_attn_kernel(inv_hw, x_ref, w1_ref, b1_ref, w2_ref, b2_ref,
                      att_ref, sum_sc):
    # x_ref: (1, C, T); att_ref: (1, C, 1) f32; sum_sc: (C, 1) f32 scratch.
    t = pl.program_id(1)

    @pl.when(t == 0)
    def _():
        sum_sc[...] = jnp.zeros_like(sum_sc)

    sum_sc[...] += jnp.sum(x_ref[0], axis=-1, keepdims=True,
                           dtype=jnp.float32)                 # (C, 1)

    @pl.when(t == pl.num_programs(1) - 1)
    def _():
        pooled = sum_sc[...] * inv_hw                                     # (C, 1)
        h = jnp.dot(w1_ref[...], pooled,
                    preferred_element_type=jnp.float32) + b1_ref[...]     # (Ch, 1)
        h = jnp.maximum(h, 0.0)
        a = jnp.dot(w2_ref[...], h,
                    preferred_element_type=jnp.float32) + b2_ref[...]     # (C, 1)
        att_ref[0] = jax.nn.sigmoid(a)


def _scale_kernel(x_ref, a_ref, o_ref):
    # x_ref: (1, C, T); a_ref: (1, C, 1) f32 -> lane-broadcast rescale in the
    # input dtype (no f32 copy of the tile).
    o_ref[...] = x_ref[...] * a_ref[...].astype(o_ref.dtype)


# ---------------------------------------------------------------------------
# Wrapper.
# ---------------------------------------------------------------------------
def channel_attention(x_nchw, w1, b1, w2, b2, *, force_tiled=False,
                      hw_tile=None, donate_x=False):
    """x_nchw: (B, C, H, W).  w1: (Ch, C), b1: (Ch,), w2: (C, Ch), b2: (C,)
    (torch.nn.Linear convention: weight is (out, in))."""
    B, C, H, W = x_nchw.shape
    Ch = w1.shape[0]
    HW = H * W
    inv_hw = float(1.0 / HW)

    small_vmem, fused_block_limit, vmem_cap = _vmem_budget()

    # (B, C, H, W) -> (B, C, HW): contiguous trailing dims, no data movement.
    x = x_nchw.reshape(B, C, HW)
    itemsize = jnp.dtype(x.dtype).itemsize
    block_bytes = C * HW * itemsize

    w1f = w1.astype(jnp.float32)
    w2f = w2.astype(jnp.float32)
    b1c = b1.reshape(Ch, 1).astype(jnp.float32)
    b2c = b2.reshape(C, 1).astype(jnp.float32)
    weight_bytes = (w1f.size + b1c.size + w2f.size + b2c.size) * 4

    use_tiled = force_tiled or block_bytes > fused_block_limit
    # On 2-TC chips a batch of 1 only exposes 1-way grid parallelism on the
    # fused path; split the dominant rescale traffic over HW tiles instead.
    if small_vmem and B == 1 and block_bytes >= (1 << 20):
        use_tiled = True

    if not use_tiled:
        # ------------------ fused single-pass path ------------------
        vmem_limit = int(min(max(4 * block_bytes + 2 * weight_bytes + (2 << 20),
                                 4 << 20), vmem_cap))
        io_alias = {0: 0} if donate_x else {}
        out = pl.pallas_call(
            functools.partial(_fused_kernel, inv_hw),
            out_shape=jax.ShapeDtypeStruct((B, C, HW), x.dtype),
            grid_spec=pltpu.PrefetchScalarGridSpec(
                num_scalar_prefetch=0,
                grid=(B,),
                in_specs=[
                    pl.BlockSpec((1, C, HW), lambda b: (b, 0, 0)),
                    pl.BlockSpec((Ch, C), lambda b: (0, 0)),
                    pl.BlockSpec((Ch, 1), lambda b: (0, 0)),
                    pl.BlockSpec((C, Ch), lambda b: (0, 0)),
                    pl.BlockSpec((C, 1), lambda b: (0, 0)),
                ],
                out_specs=pl.BlockSpec((1, C, HW), lambda b: (b, 0, 0)),
            ),
            compiler_params=pltpu.CompilerParams(
                dimension_semantics=("parallel",),
                vmem_limit_bytes=vmem_limit),
            input_output_aliases=io_alias,
        )(x, w1f, b1c, w2f, b2c)
        return out.reshape(B, C, H, W)

    # ------------------ two-pass HW-tiled path ------------------
    # Pad the lane (spatial) axis to a multiple of 128 so tiling is always
    # legal; padded zeros don't affect the sum and we divide by the true HW.
    HW_pad = ((HW + 127) // 128) * 128
    if HW_pad != HW:
        x = jnp.pad(x, ((0, 0), (0, 0), (0, HW_pad - HW)))

    tile = hw_tile if hw_tile is not None else _pick_hw_tile(HW_pad, C, itemsize)
    n_t = HW_pad // tile
    tile_bytes = C * tile * itemsize
    vmem_limit = int(min(max(4 * tile_bytes + 2 * weight_bytes + (2 << 20),
                             4 << 20), vmem_cap))

    # Pass 1: per-(batch, channel) spatial sums (f32 accumulation) + the tiny
    # squeeze/excite MLP on the last tile -> attention column (B, C, 1) f32.
    att3 = pl.pallas_call(
        functools.partial(_pool_attn_kernel, inv_hw),
        out_shape=jax.ShapeDtypeStruct((B, C, 1), jnp.float32),
        grid_spec=pltpu.PrefetchScalarGridSpec(
            num_scalar_prefetch=0,
            grid=(B, n_t),
            in_specs=[
                pl.BlockSpec((1, C, tile), lambda b, t: (b, 0, t)),
                pl.BlockSpec((Ch, C), lambda b, t: (0, 0)),
                pl.BlockSpec((Ch, 1), lambda b, t: (0, 0)),
                pl.BlockSpec((C, Ch), lambda b, t: (0, 0)),
                pl.BlockSpec((C, 1), lambda b, t: (0, 0)),
            ],
            out_specs=pl.BlockSpec((1, C, 1), lambda b, t: (b, 0, 0)),
            scratch_shapes=[pltpu.VMEM((C, 1), jnp.float32)],
        ),
        compiler_params=pltpu.CompilerParams(
            dimension_semantics=("parallel", "arbitrary"),
            vmem_limit_bytes=vmem_limit),
    )(x, w1f, b1c, w2f, b2c)

    # Pass 2: broadcast rescale, parallel over (batch, HW tiles).
    io_alias = {0: 0} if donate_x else {}
    out = pl.pallas_call(
        _scale_kernel,
        out_shape=jax.ShapeDtypeStruct((B, C, HW_pad), x.dtype),
        grid_spec=pltpu.PrefetchScalarGridSpec(
            num_scalar_prefetch=0,
            grid=(B, n_t),
            in_specs=[
                pl.BlockSpec((1, C, tile), lambda b, t: (b, 0, t)),
                pl.BlockSpec((1, C, 1), lambda b, t: (b, 0, 0)),
            ],
            out_specs=pl.BlockSpec((1, C, tile), lambda b, t: (b, 0, t)),
        ),
        compiler_params=pltpu.CompilerParams(
            dimension_semantics=("parallel", "parallel"),
            vmem_limit_bytes=vmem_limit),
        input_output_aliases=io_alias,
    )(x, att3)

    if HW_pad != HW:
        out = out[:, :, :HW]
    return out.reshape(B, C, H, W)


def _reference(x_nchw, w1, b1, w2, b2):
    avg = jnp.mean(x_nchw, axis=(2, 3))                    # (B, C)
    h = jnp.maximum(avg @ w1.T + b1, 0.0)                  # (B, Ch)
    a = jax.nn.sigmoid(h @ w2.T + b2)                      # (B, C)
    return x_nchw * a[:, :, None, None]


if __name__ == "__main__":
    # Small shapes consistent with the module: channels // reduction_ratio > 0.
    B, C, H, W = 2, 32, 16, 16
    reduction_ratio = 4
    Ch = C // reduction_ratio                               # hidden = 8

    key = jax.random.PRNGKey(0)
    kx, k1, k2, k3, k4 = jax.random.split(key, 5)

    x = jax.random.normal(kx, (B, C, H, W), dtype=jnp.float32)

    # Deterministic nn.Linear-style init: U(-1/sqrt(fan_in), 1/sqrt(fan_in)).
    lim1 = 1.0 / (C ** 0.5)
    w1 = jax.random.uniform(k1, (Ch, C), jnp.float32, -lim1, lim1)
    b1 = jax.random.uniform(k2, (Ch,), jnp.float32, -lim1, lim1)
    lim2 = 1.0 / (Ch ** 0.5)
    w2 = jax.random.uniform(k3, (C, Ch), jnp.float32, -lim2, lim2)
    b2 = jax.random.uniform(k4, (C,), jnp.float32, -lim2, lim2)

    ref = _reference(x, w1, b1, w2, b2)

    # Default fused single-pass path.
    out_fused = channel_attention(x, w1, b1, w2, b2)
    jax.block_until_ready(out_fused)
    assert out_fused.shape == x.shape, (out_fused.shape, x.shape)
    assert jnp.allclose(out_fused, ref, atol=1e-5, rtol=1e-5), "fused mismatch"

    # Exercise the HW-tiled two-pass path (large images / v7x VMEM / B==1).
    out_tiled = channel_attention(x, w1, b1, w2, b2, force_tiled=True,
                                  hw_tile=128)
    jax.block_until_ready(out_tiled)
    assert jnp.allclose(out_tiled, ref, atol=1e-5, rtol=1e-5), "tiled mismatch"

    # Exercise the odd-HW padding fallback of the tiled path (HW = 225).
    xo = jax.random.normal(kx, (B, C, 15, 15), dtype=jnp.float32)
    ref_o = _reference(xo, w1, b1, w2, b2)
    out_o = channel_attention(xo, w1, b1, w2, b2, force_tiled=True)
    jax.block_until_ready(out_o)
    assert jnp.allclose(out_o, ref_o, atol=1e-5, rtol=1e-5), "padded mismatch"

    print("KERNEL_OK")
</pallas_src>

<mosaic_0001>
module attributes {stable_mosaic.version = 11 : i64} {
  func.func @_fused_kernel(%arg0: i32, %arg1: memref<1x32x256xf32, #tpu.memory_space<vmem>>, %arg2: memref<8x32xf32, #tpu.memory_space<vmem>>, %arg3: memref<8x1xf32, #tpu.memory_space<vmem>>, %arg4: memref<32x8xf32, #tpu.memory_space<vmem>>, %arg5: memref<32x1xf32, #tpu.memory_space<vmem>>, %arg6: memref<1x32x256xf32, #tpu.memory_space<vmem>>) attributes {dimension_semantics = [#tpu.dimension_semantics<parallel>], iteration_bounds = array<i64: 2>, scalar_prefetch = 0 : i64, scratch_operands = 0 : i64, tpu.core_type = #tpu.core_type<tc>, window_params = [{transform_indices = @transform_0, window_bounds = array<i64: 1, 32, 256>}, {pipeline_mode = #tpu.pipeline_mode<synchronous>, transform_indices = @transform_1, window_bounds = array<i64: 8, 32>}, {pipeline_mode = #tpu.pipeline_mode<synchronous>, transform_indices = @transform_2, window_bounds = array<i64: 8, 1>}, {pipeline_mode = #tpu.pipeline_mode<synchronous>, transform_indices = @transform_3, window_bounds = array<i64: 32, 8>}, {pipeline_mode = #tpu.pipeline_mode<synchronous>, transform_indices = @transform_4, window_bounds = array<i64: 32, 1>}, {transform_indices = @transform_5, window_bounds = array<i64: 1, 32, 256>}]} {
    %c0 = arith.constant 0 : index
    %c0_0 = arith.constant 0 : index
    %c0_1 = arith.constant 0 : index
    %0 = vector.load %arg1[%c0, %c0_0, %c0_1] : memref<1x32x256xf32, #tpu.memory_space<vmem>>, vector<1x32x256xf32>
    %1 = vector.shape_cast %0 : vector<1x32x256xf32> to vector<32x256xf32>
    %cst = arith.constant dense<0.000000e+00> : vector<32xf32>
    %2 = vector.multi_reduction <add>, %1, %cst [1] : vector<32x256xf32> to vector<32xf32>
    %3 = vector.shape_cast %2 : vector<32xf32> to vector<32x1xf32>
    %cst_2 = arith.constant 3.906250e-03 : f32
    %4 = vector.broadcast %cst_2 : f32 to vector<32x1xf32>
    %5 = arith.mulf %3, %4 : vector<32x1xf32>
    %c0_3 = arith.constant 0 : index
    %c0_4 = arith.constant 0 : index
    %6 = vector.load %arg2[%c0_3, %c0_4] : memref<8x32xf32, #tpu.memory_space<vmem>>, vector<8x32xf32>
    %cst_5 = arith.constant dense<0.000000e+00> : vector<8x1xf32>
    %7 = tpu.matmul %6, %5, %cst_5 {dimension_numbers = #tpu.dot_dimension_numbers<[1], [0], [0], [1], [0, 0, 1, 1], [], []>} : vector<8x32xf32>, vector<32x1xf32>, vector<8x1xf32> -> vector<8x1xf32>
    %c0_6 = arith.constant 0 : index
    %c0_7 = arith.constant 0 : index
    %8 = vector.load %arg3[%c0_6, %c0_7] : memref<8x1xf32, #tpu.memory_space<vmem>>, vector<8x1xf32>
    %9 = arith.addf %7, %8 : vector<8x1xf32>
    %cst_8 = arith.constant 0.000000e+00 : f32
    %10 = vector.broadcast %cst_8 : f32 to vector<8x1xf32>
    %11 = arith.maximumf %9, %10 : vector<8x1xf32>
    %c0_9 = arith.constant 0 : index
    %c0_10 = arith.constant 0 : index
    %12 = vector.load %arg4[%c0_9, %c0_10] : memref<32x8xf32, #tpu.memory_space<vmem>>, vector<32x8xf32>
    %cst_11 = arith.constant dense<0.000000e+00> : vector<32x1xf32>
    %13 = tpu.matmul %12, %11, %cst_11 {dimension_numbers = #tpu.dot_dimension_numbers<[1], [0], [0], [1], [0, 0, 1, 1], [], []>} : vector<32x8xf32>, vector<8x1xf32>, vector<32x1xf32> -> vector<32x1xf32>
    %c0_12 = arith.constant 0 : index
    %c0_13 = arith.constant 0 : index
    %14 = vector.load %arg5[%c0_12, %c0_13] : memref<32x1xf32, #tpu.memory_space<vmem>>, vector<32x1xf32>
    %15 = arith.addf %13, %14 : vector<32x1xf32>
    %16 = arith.negf %15 : vector<32x1xf32>
    %17 = math.exp %16 : vector<32x1xf32>
    %cst_14 = arith.constant 1.000000e+00 : f32
    %18 = vector.broadcast %cst_14 : f32 to vector<32x1xf32>
    %19 = arith.addf %18, %17 : vector<32x1xf32>
    %20 = arith.divf %18, %19 : vector<32x1xf32>
    %21 = vector.broadcast %20 : vector<32x1xf32> to vector<32x256xf32>
    %22 = arith.mulf %1, %21 : vector<32x256xf32>
    %c0_15 = arith.constant 0 : index
    %c0_16 = arith.constant 0 : index
    %c0_17 = arith.constant 0 : index
    %23 = vector.load %arg6[%c0_15, %c0_16, %c0_17] : memref<1x32x256xf32, #tpu.memory_space<vmem>>, vector<1x32x256xf32>
    %24 = vector.shape_cast %23 : vector<1x32x256xf32> to vector<32x256xf32>
    %25 = vector.shape_cast %22 : vector<32x256xf32> to vector<1x32x256xf32>
    tpu.vector_store %arg6[%c0_15, %c0_16, %c0_17], %25 {strides = array<i32>} : memref<1x32x256xf32, #tpu.memory_space<vmem>>, vector<1x32x256xf32>,
    return
  }
  func.func @transform_0(%arg0: i32) -> (i32, i32, i32) {
    %c0_i32 = arith.constant 0 : i32
    %c0_i32_0 = arith.constant 0 : i32
    %c0_i32_1 = arith.constant 0 : i32
    return %arg0, %c0_i32, %c0_i32_0 : i32, i32, i32
  }
  func.func @transform_1(%arg0: i32) -> (i32, i32) {
    %c0_i32 = arith.constant 0 : i32
    %c0_i32_0 = arith.constant 0 : i32
    %c0_i32_1 = arith.constant 0 : i32
    return %c0_i32, %c0_i32_0 : i32, i32
  }
  func.func @transform_2(%arg0: i32) -> (i32, i32) {
    %c0_i32 = arith.constant 0 : i32
    %c0_i32_0 = arith.constant 0 : i32
    %c0_i32_1 = arith.constant 0 : i32
    return %c0_i32, %c0_i32_0 : i32, i32
  }
  func.func @transform_3(%arg0: i32) -> (i32, i32) {
    %c0_i32 = arith.constant 0 : i32
    %c0_i32_0 = arith.constant 0 : i32
    %c0_i32_1 = arith.constant 0 : i32
    return %c0_i32, %c0_i32_0 : i32, i32
  }
  func.func @transform_4(%arg0: i32) -> (i32, i32) {
    %c0_i32 = arith.constant 0 : i32
    %c0_i32_0 = arith.constant 0 : i32
    %c0_i32_1 = arith.constant 0 : i32
    return %c0_i32, %c0_i32_0 : i32, i32
  }
  func.func @transform_5(%arg0: i32) -> (i32, i32, i32) {
    %c0_i32 = arith.constant 0 : i32
    %c0_i32_0 = arith.constant 0 : i32
    %c0_i32_1 = arith.constant 0 : i32
    return %arg0, %c0_i32, %c0_i32_0 : i32, i32, i32
  }
}

</mosaic_0001>

<bundles_post_ra>
// kernel: tpu_custom_call.1
= control target key start
LH: loop header
LB: loop body
LE: loop exit
PB: predicated region body
PF: predicated region fallthrough
CT: control target
= control target key end

     0   :  { %10 = vsyncpa [#allocation3], 0  ;;  %s970_s0 = inlined_call_operand.hbm [shape: f32[2,32,256], index: 0, kind: input, shape index: {}]   ;;  %s971_s1 = inlined_call_operand.vmem [shape: f32[8,32], index: 1, kind: input, shape index: {}]   ;;  %s972_s2 = inlined_call_operand.vmem [shape: f32[8,1], index: 2, kind: input, shape index: {}]   ;;  %s973_s3 = inlined_call_operand.vmem [shape: f32[32,8], index: 3, kind: input, shape index: {}]   ;;  %s974_s4 = inlined_call_operand.vmem [shape: f32[32,1], index: 4, kind: input, shape index: {}]   ;;  %s975_s5 = inlined_call_operand.hbm [shape: f32[2,32,256], index: 5, kind: output, shape index: {}]  }
   0x1   :  { %12 = vsyncpa [#allocation3 + $0x1], 0 }
   0x2   :  { %13 = vsyncpa [#allocation4], 0 }
   0x3   :  { %15 = vsyncpa [#allocation4 + $0x1], 0  ;;  %s777_s18 = smov 0   ;;  %s779_s19 = smov 0  }
   0x4   :  { %s781_s20 = smov 0   ;;  %s783_s21 = smov 0  }
   0x5 LB: > { %s798_s22 = sadd.s32 4294967295, %s740_s21   ;;  %s547_s23 = sadd.s32 4294967294, %s740_s21   ;;  %s740_s21 = sphi %s783_s21, %s985_s21   ;;  %s736_s20 = sphi %s781_s20, %s984_s20   ;;  %s732_s19 = sphi %s779_s19, %s983_s19   ;;  %s728_s18 = sphi %s777_s18, %s982_s18  }
   0x6   : > { %s802_s24 = sadd.s32 1, %s740_s21   ;;  %s28_s25 = sadd.s32 1, %s736_s20 }
   0x7   : > { %s25_s26 = ssub.s32 %s740_s21, %s802_s24  ;;  %p35_p0 = scmp.ne.s32.totalorder %s736_s20, %s732_s19 }
   0x8   : > { %p26_p1 = scmp.eq.s32.totalorder %s25_s26, 0  ;;  %p36_p2 = scmp.eq.s32.totalorder %s740_s21, 0 }
   0x9   : > { %p41_p3 = scmp.ne.s32.totalorder %s732_s19, %s728_s18  ;;  %p42_p4 = scmp.eq.s32.totalorder %s798_s22, 0 }
   0xa   : > { %s814_s27 = scalar_select %p26_p1, %s736_s20, %s28_s25  }
   0xb   : > { %p816_p5 = por %p36_p2, %p35_p0  ;;  %p820_p6 = por %p42_p4, %p41_p3 }
   0xc   : > { %p149_p7 = scmp.eq.s32.totalorder %s798_s22, 1  ;;  %p155_p8 = scmp.eq.s32.totalorder %s547_s23, 1 }
   0xd   : > { %p586_p10 = scmp.lt.s32.totalorder %s740_s21, 2  ;;  %s187_s7 = sand.u32 1, %s736_s20  }
   0xe   : > { %p827_p11 = por %p149_p7, %p35_p0  ;;  %p831_p12 = por %p155_p8, %p41_p3 }
   0xf   : > { %s570_s8 = sshll.u32 %s740_s21, 6  ;;  %s550_s9 = sshll.u32 %s187_s7, 6 }
  0x10   : > { %s196_s12 = scalar_lea.hbm %s970_s0, %s570_s8  ;;  %s191_s14 = scalar_lea.vmem [#allocation2], %s550_s9 }
  0x11   : > { %s197_s13 = sshll.u32 %s196_s12, 4  ;;  %s199_s15 = sshll.u32 %s191_s14, 4  ;;  %s198_s13 = int_to_ptr.hbm [resolvable:$true] %s197_s13  ;;  %s200_s15 = int_to_ptr.vmem [resolvable:$true] %s199_s15 }
  0x12   : > { %p842_p13 = pnand %p586_p10, %p816_p5  ;;  %p553_p0 = scmp.ge.s32.totalorder %s740_s21, 1 }
  0x13   : > { %p207_p1 = scmp.lt.s32.totalorder %s740_s21, 3  ;;  %s188_s17 = scalar_lea.sflag [#allocation3], %s187_s7 }
  0x14   : > { %s644_s23 = sshra.s32 %s198_s13, 4  ;;  %p648_p3 = pneg %p842_p13  ;;  %s645_s23 = int_to_ptr.hbm [resolvable:$true] %s644_s23 }
  0x15   : > { %s646_s25 = scalar_lea.hbm %s645_s23, 64  ;;  %s651_s28 = scalar_lea.hbm %s970_s0, 128 }
  0x16   : > { %p647_p2 = scmp.ne.s32.totalorder %s645_s23, %s646_s25  ;;  %p652_p5 = scmp.lt.s32.totalorder %s645_s23, %s970_s0 }
  0x17   : > { %p653_p8 = scmp.lt.s32.totalorder %s651_s28, %s646_s25 }
  0x18   : > { %p649_p4 = pnand %p648_p3, %p647_p2 }
  0x19   : > { %p654_p10 = por %p653_p8, %p652_p5 }
  0x1a   : > { %p650_p7 = pneg %p649_p4 }
  0x1c   : > { %p655_p9 = pnand %p654_p10, %p650_p7 }
  0x1e   : > { %658 = shalt.err (!%p655_p9)
}
  0x1f   : > { %s742_s7 = smov 256   ;;  %s743_s11 = smov 16  }
  0x20   : > { %581 = dma.hbm_to_vmem [thread:$0]  (!%p842_p13), %s198_s13, 1024, %s200_s15, %s188_s17, %s742_s7, %s742_s7, %s743_s11  }
  0x21   : > { %p208_p2 = pnand %p553_p0, %p207_p1 }
  0x22   : > { %s863_s12 = sand.u32 (!%p208_p2), 1, %s732_s19  }
  0x23   : > { %211 = sbr.rel (%p208_p2) target bundleno = 599 (0x257), region = 40  ;;  %s554_s14 = sshll.u32 (!%p208_p2), %s863_s12, 6 }
  0x24   : > { %s214_s23 = scalar_lea.sflag (!%p208_p2), [#allocation3], %s863_s12  ;;  %s217_s25 = scalar_lea.vmem (!%p208_p2), [#allocation2], %s554_s14 }
  0x28   : > { %719 = dma.done.wait (%p820_p6), %s214_s23, 1024  }
  0x29   : > { %721 = vsyncadd (%p820_p6), %s214_s23, 4294966272  ;;  %v873_v0 = vld [vmem:[%s217_s25 + $0x30] sm:$0xff]  ;;  %v875_v1 = vld [vmem:[%s217_s25 + $0x38] sm:$0xff]  ;;  %vm271_vm0 = vcmask 261120   ;;  %vm304_vm1 = vcmask 64512   ;;  %v744_v30 = vmov 0  }
  0x2a   : > { %v877_v2 = vld [vmem:[%s217_s25 + $0x10] sm:$0xff]  ;;  %v262_v3 = vadd.f32 %v875_v1, %v873_v0  ;;  %v881_v4 = vld [vmem:[%s217_s25 + $0x18] sm:$0xff]  ;;  %v885_v6 = vld [vmem:[%s217_s25 + $0x20] sm:$0xff]  ;;  %625 = vset.pattern.permute.xlu2 %v744_v30  ;;  %627 = vset.pattern.permute.xlu1 %v744_v30  ;;  %s244_s8 = scalar_lea.vmem [#allocation5], %s554_s14  ;;  %s571_s28 = sshll.u32 %s798_s22, 6 }
  0x2b   : > { %v256_v5 = vadd.f32 %v881_v4, %v877_v2  ;;  %v887_v7 = vld [vmem:[%s217_s25 + $0x28] sm:$0xff]  ;;  %v889_v8 = vld [vmem:[%s217_s25] sm:$0xff]  ;;  %v299_v27 = vld [vmem:[%s973_s3 + $0x18] sm:$0xff]  ;;  %626 = vset.pattern.permute.xlu0 %v744_v30  ;;  %s470_s14 = scalar_lea.hbm %s975_s5, %s571_s28  ;;  %s471_s7 = sshll.u32 %s244_s8, 4  ;;  %s472_s7 = int_to_ptr.vmem [resolvable:$true] %s471_s7 }
  0x2c   : > { %263 = vadd.xlane.f32.xlu0 %v262_v3  ;;  %v891_v9 = vld [vmem:[%s217_s25 + $0x8] sm:$0xff]  ;;  %v259_v10 = vadd.f32 %v887_v7, %v885_v6  ;;  %v269_v20 = vld [vmem:[%s971_s1] sm:$0xff]  ;;  %v298_v28 = vld [vmem:[%s973_s3 + $0x10] sm:$0xff]  ;;  %s473_s11 = sshll.u32 %s470_s14, 4  ;;  %s459_s22 = scalar_lea.sflag [#allocation4], %s863_s12  ;;  %s474_s11 = int_to_ptr.hbm [resolvable:$true] %s473_s11 }
  0x2d   : > { %257 = vadd.xlane.f32.xlu1 %v256_v5  ;;  %v253_v11 = vadd.f32 %v891_v9, %v889_v8  ;;  %v270_v21 = vld [vmem:[%s972_s2] sm:$0xff]  ;;  %v297_v26 = vld [vmem:[%s973_s3 + $0x8] sm:$0xff]  ;;  %v303_v35 = vld [vmem:[%s974_s4 + $0x18] sm:$0xff]  ;;  %s688_s23 = sshra.s32 %s474_s11, 4  ;;  %s694_s15 = scalar_lea.hbm %s975_s5, 128  ;;  %s689_s23 = int_to_ptr.hbm [resolvable:$true] %s688_s23 }
  0x2e   : > { %v296_v25 = vld [vmem:[%s973_s3] sm:$0xff]  ;;  %v301_v34 = vld [vmem:[%s974_s4 + $0x8] sm:$0xff]  ;;  %v302_v44 = vld [vmem:[%s974_s4 + $0x10] sm:$0xff]  ;;  %s690_s25 = scalar_lea.hbm %s689_s23, 64  ;;  %p695_p0 = scmp.lt.s32.totalorder %s689_s23, %s975_s5 }
  0x2f   : > { %v300_v29 = vld [vmem:[%s974_s4] sm:$0xff]  ;;  %p691_p6 = scmp.ne.s32.totalorder %s689_s23, %s690_s25  ;;  %p696_p1 = scmp.lt.s32.totalorder %s694_s15, %s690_s25 }
  0x31   : > { %p692_p9 = pnand %p691_p6, %p827_p11  ;;  %p697_p3 = por %p696_p1, %p695_p0 }
  0x33   : > { %p693_p13 = pneg %p692_p9 }
  0x34   : > { %260 = vadd.xlane.f32.xlu0 %v259_v10 }
  0x35   : > { %254 = vadd.xlane.f32.xlu1 %v253_v11  ;;  %p698_p4 = pnand %p697_p3, %p693_p13 }
  0x9f   : > { %v264_v12 = vpop.xlane.xlu0 %263 }
  0xa0   : > { %v268_v13 = vmul.f32 0.00390625, %v264_v12  ;;  %v258_v14 = vpop.xlane.xlu1 %257 }
  0xa1   : > { %v266_v18 = vmul.f32 0.00390625, %v258_v14 }
  0xa2   : > { %287 = vmatpush.msra.mxu0 %v268_v13 }
  0xa7   : > { %v261_v15 = vpop.xlane.xlu0 %260 }
  0xa8   : > { %v267_v16 = vmul.f32 0.00390625, %v261_v15  ;;  %v255_v17 = vpop.xlane.xlu1 %254 }
  0xa9   : > { %v265_v19 = vmul.f32 0.00390625, %v255_v17 }
  0xaa   : > { %288 = vmatpush.msra.mxu0 %v267_v16 }
  0xac   : > { %289 = vmatpush.msra.mxu0 %v266_v18 }
  0xae   : > { %290 = vmatpush.msra.mxu0 %v265_v19 }
  0xaf   : > { %556 = vmatmul.msk.f32.vlgmr.msra.gmra.mxu0 %vm271_vm0, %v269_v20 }
 0x12c   : > { %v292_v22 = vpop.f32.mrf.mxu0 }
 0x12d   : > { %v293_v23 = vadd.f32 %v292_v22, %v270_v21 }
 0x12f   : > { %v295_v24 = vmax.f32 %v293_v23, 0.0 }
 0x131   : > { %332 = vmatpush.msra.mxu1 %v295_v24  ;;  %572 = vmatpush.msra.mxu2 %v295_v24 }
 0x132   : > { %573 = vmatpush.msra.mxu3 %v295_v24  ;;  %557 = vmatmul.msk.f32.vlgmr.msra.gmra.mxu1 %vm304_vm1, %v296_v25 }
 0x133   : > { %558 = vmatmul.msk.f32.vlgmr.msra.gmra.mxu2 %vm304_vm1, %v297_v26  ;;  %560 = vmatmul.msk.f32.vlgmr.msra.gmra.mxu3 %vm304_vm1, %v299_v27 }
 0x13b   : > { %559 = vmatmul.msk.f32.gmra.mxu2 %vm304_vm1, %v298_v28 }
 0x1af   : > { %v334_v31 = vpop.f32.mrf.mxu1 }
 0x1b0   : > { %v335_v32 = vadd.f32 %v334_v31, %v300_v29 }
 0x1b2   : > { %v561_v33 = vmul.f32 -1.442695, %v335_v32 }
 0x1b4   : > { %628 = vpow2.f32 %v561_v33 }
 0x1b6   : > { %v337_v36 = vpop.f32.mrf.mxu2  ;;  %v343_v37 = vpop.f32.mrf.mxu3 }
 0x1b7   : > { %v338_v38 = vadd.f32 %v337_v36, %v301_v34  ;;  %v344_v39 = vadd.f32 %v343_v37, %v303_v35 }
 0x1b9   : > { %v562_v40 = vmul.f32 -1.442695, %v338_v38  ;;  %v564_v41 = vmul.f32 -1.442695, %v344_v39 }
 0x1ba   : > { %v629_v42 = vpop.eup %628 }
 0x1bb   : > { %v358_v43 = vadd.f32 1.0, %v629_v42  ;;  %630 = vpow2.f32 %v562_v40 }
 0x1bc   : > { %632 = vpow2.f32 %v564_v41 }
 0x1bd   : > { %634 = vrcp.f32 %v358_v43  ;;  %v373_v54 = vand.u32 2147483648, %v358_v43  ;;  %vm367_vm2 = vweird.f32 %v358_v43  ;;  %v371_v56 = vand.u32 2147483647, %v358_v43 }
 0x1be   : > { %v340_v45 = vpop.f32.mrf.mxu2 }
 0x1bf   : > { %v341_v46 = vadd.f32 %v340_v45, %v302_v44  ;;  %v374_v59 = vor.u32 1.1754944e-38, %v373_v54  ;;  %vm372_vm5 = vcmp.eq.f32.partialorder %v371_v56, 8.507059e+37 }
 0x1c1   : > { %v631_v47 = vpop.eup %630  ;;  %v563_v48 = vmul.f32 -1.442695, %v341_v46 }
 0x1c2   : > { %v633_v49 = vpop.eup %632  ;;  %v359_v50 = vadd.f32 1.0, %v631_v47 }
 0x1c3   : > { %v635_v51 = vpop.eup %634  ;;  %v361_v52 = vadd.f32 1.0, %v633_v49  ;;  %636 = vpow2.f32 %v563_v48 }
 0x1c4   : > { %638 = vrcp.f32 %v359_v50  ;;  %v363_v53 = vmul.f32 %v635_v51, %v358_v43  ;;  %vm368_vm3 = vweird.f32 %v635_v51  ;;  %v388_v16 = vand.u32 2147483648, %v359_v50 }
 0x1c5   : > { %640 = vrcp.f32 %v361_v52  ;;  %vm369_vm4 = vmor %vm367_vm2, %vm368_vm3  ;;  %vm412_vm6 = vweird.f32 %v361_v52  ;;  %v418_v14 = vand.u32 2147483648, %v361_v52  ;;  %v416_v18 = vand.u32 2147483647, %v361_v52 }
 0x1c6   : > { %v364_v55 = vsub.f32 1.0, %v363_v53  ;;  %v386_v19 = vand.u32 2147483647, %v359_v50  ;;  %vm382_vm9 = vweird.f32 %v359_v50  ;;  %v389_v25 = vor.u32 1.1754944e-38, %v388_v16 }
 0x1c7   : > { %v419_v23 = vor.u32 1.1754944e-38, %v418_v14  ;;  %vm417_vm12 = vcmp.eq.f32.partialorder %v416_v18, 8.507059e+37 }
 0x1c8   : > { %v365_v57 = vmul.f32 %v635_v51, %v364_v55  ;;  %vm387_vm13 = vcmp.eq.f32.partialorder %v386_v19, 8.507059e+37 }
 0x1c9   : > { %v637_v58 = vpop.eup %636 }
 0x1ca   : > { %v639_v60 = vpop.eup %638  ;;  %v360_v61 = vadd.f32 1.0, %v637_v58  ;;  %v366_v62 = vadd.f32 %v635_v51, %v365_v57 }
 0x1cb   : > { %v641_v63 = vpop.eup %640  ;;  %v378_v3 = vmul.f32 %v639_v60, %v359_v50  ;;  %vm383_vm7 = vweird.f32 %v639_v60 }
 0x1cc   : > { %642 = vrcp.f32 %v360_v61  ;;  %v370_v5 = vsel %vm369_vm4, %v635_v51, %v366_v62  ;;  %v408_v10 = vmul.f32 %v641_v63, %v361_v52  ;;  %vm413_vm8 = vweird.f32 %v641_v63  ;;  %vm384_vm10 = vmor %vm382_vm9, %vm383_vm7 }
 0x1cd   : > { %v375_v11 = vsel %vm372_vm5, %v374_v59, %v370_v5  ;;  %v379_v12 = vsub.f32 1.0, %v378_v3  ;;  %vm414_vm11 = vmor %vm412_vm6, %vm413_vm8  ;;  %v403_v31 = vand.u32 2147483648, %v360_v61  ;;  %v401_v33 = vand.u32 2147483647, %v360_v61 }
 0x1ce   : > { %424 = vperm.xlu2 %625, %v375_v11   ;;  %v409_v13 = vsub.f32 1.0, %v408_v10  ;;  %vm397_vm15 = vweird.f32 %v360_v61 }
 0x1cf   : > { %v380_v15 = vmul.f32 %v639_v60, %v379_v12  ;;  %v404_v35 = vor.u32 1.1754944e-38, %v403_v31  ;;  %vm402_vm1 = vcmp.eq.f32.partialorder %v401_v33, 8.507059e+37 }
 0x1d0   : > { %v410_v17 = vmul.f32 %v641_v63, %v409_v13 }
 0x1d1   : > { %v381_v20 = vadd.f32 %v639_v60, %v380_v15 }
 0x1d2   : > { %v643_v21 = vpop.eup %642  ;;  %v411_v22 = vadd.f32 %v641_v63, %v410_v17 }
 0x1d3   : > { %v385_v24 = vsel %vm384_vm10, %v639_v60, %v381_v20  ;;  %v393_v26 = vmul.f32 %v643_v21, %v360_v61  ;;  %vm398_vm14 = vweird.f32 %v643_v21 }
 0x1d4   : > { %v415_v27 = vsel %vm414_vm11, %v641_v63, %v411_v22  ;;  %v390_v29 = vsel %vm387_vm13, %v389_v25, %v385_v24  ;;  %vm399_vm0 = vmor %vm397_vm15, %vm398_vm14 }
 0x1d5   : > { %v420_v28 = vsel %vm417_vm12, %v419_v23, %v415_v27  ;;  %v394_v30 = vsub.f32 1.0, %v393_v26 }
 0x1d6   : > { %439 = vperm.xlu1 %627, %v420_v28   ;;  %429 = vperm.xlu2 %625, %v390_v29  }
 0x1d7   : > { %v395_v32 = vmul.f32 %v643_v21, %v394_v30 }
 0x1d9   : > { %v396_v34 = vadd.f32 %v643_v21, %v395_v32 }
 0x1db   : > { %v400_v36 = vsel %vm399_vm0, %v643_v21, %v396_v34 }
 0x1dc   : > { %v405_v37 = vsel %vm402_vm1, %v404_v35, %v400_v36 }
 0x1dd   : > { %434 = vperm.xlu0 %626, %v405_v37  }
 0x228   : > { %v425_v38 = vpop.permute.xlu2 %424 }
 0x229   : > { %v442_v39 = vmul.f32 %v425_v38, %v889_v8  ;;  %v443_v40 = vmul.f32 %v425_v38, %v891_v9 }
 0x22b   : > { %450 = vst [vmem:[%s244_s8] sm:$0xff] %v442_v39 }
 0x22c   : > { %451 = vst [vmem:[%s244_s8 + $0x8] sm:$0xff] %v443_v40 }
 0x230   : > { %v430_v41 = vpop.permute.xlu2 %429 }
 0x231   : > { %v444_v42 = vmul.f32 %v430_v41, %v877_v2  ;;  %v445_v43 = vmul.f32 %v430_v41, %v881_v4 }
 0x233   : > { %452 = vst [vmem:[%s244_s8 + $0x10] sm:$0xff] %v444_v42 }
 0x234   : > { %453 = vst [vmem:[%s244_s8 + $0x18] sm:$0xff] %v445_v43 }
 0x248   : > { %v440_v44 = vpop.permute.xlu1 %439 }
 0x249   : > { %v448_v45 = vmul.f32 %v440_v44, %v873_v0  ;;  %v449_v8 = vmul.f32 %v440_v44, %v875_v1 }
 0x24b   : > { %456 = vst [vmem:[%s244_s8 + $0x30] sm:$0xff] %v448_v45 }
 0x24c   : > { %457 = vst [vmem:[%s244_s8 + $0x38] sm:$0xff] %v449_v8 }
 0x24f   : > { %v435_v2 = vpop.permute.xlu0 %434 }
 0x250   : > { %v446_v4 = vmul.f32 %v435_v2, %v885_v6  ;;  %v447_v9 = vmul.f32 %v435_v2, %v887_v7 }
 0x252   : > { %454 = vst [vmem:[%s244_s8 + $0x20] sm:$0xff] %v446_v4 }
 0x253   : > { %455 = vst [vmem:[%s244_s8 + $0x28] sm:$0xff] %v447_v9 }
 0x254   : > { %701 = shalt.err (!%p698_p4)
}
 0x255   : > { %s745_s12 = smov 256   ;;  %s746_s26 = smov 16  }
 0x256   : > { %576 = dma.vmem_to_hbm [thread:$0]  (%p827_p11), %s472_s7, 1024, %s474_s11, %s459_s22, %s745_s12, %s745_s12, %s746_s26  }
 0x257 PF: > { %s488_s8 = sand.u32 1, %s728_s18   ;;  %p981_p7 = scmp.ge.s32.totalorder %s740_s21, 2 }
 0x258   : > { %s489_s28 = scalar_lea.sflag [#allocation4], %s488_s8 }
 0x259   : > { %p583_p5 = pnand %p981_p7, %p831_p12 }
 0x25b   : > { %p584_p8 = pneg %p583_p5 }
 0x25d   : > { %723 = dma.done.wait (%p584_p8), %s489_s28, 1024  }
 0x25e   : > { %725 = vsyncadd (%p584_p8), %s489_s28, 4294966272  ;;  %p18_p10 = scmp.ge.s32.totalorder %s802_s24, 4   ;;  %s982_s18 = smov %s732_s19 }
 0x25f   : > { %s983_s19 = smov %s736_s20  ;;  %s984_s20 = smov %s814_s27 }
 0x260   : > { %s985_s21 = smov %s802_s24  ;;  %20 = sbr.rel (!%p18_p10) target bundleno = 5 (0x5), region = 85 }
 0x265   :  { %495 = vsyncpa [#allocation3], 1 }
 0x266   :  { %497 = vsyncpa [#allocation3 + $0x1], 1 }
 0x267   :  { %498 = vsyncpa [#allocation4], 1 }
 0x268   :  { %500 = vsyncpa [#allocation4 + $0x1], 1 }

</bundles_post_ra>
